<compile_context>
chip_gen: v7x
topology: tpu7x:2x2x1
jax: 0.10.0
libtpu: 0.0.40
codegen_flags: <defaults>
</compile_context>

<pallas_src>
import functools

import jax
import jax.numpy as jnp
import numpy as np
from jax.experimental import pallas as pl
from jax.experimental.pallas import tpu as pltpu


def _round_up(x, m):
    return (x + m - 1) // m * m


def _pick_batch_tile(B):
    """Batch tile: multiple of 8 sublanes, <= 1024 rows, and >= 2 grid steps
    whenever the (padded) batch has more than one 8-row tile, so the
    'parallel' batch axis can shard across v7x's two TensorCores."""
    b8 = _round_up(B, 8)
    if b8 <= 8:
        return b8
    half = _round_up((b8 + 1) // 2, 8)
    return min(half, 1024)


def head_kernel(x_ref, wc_ref, bias_ref, wfc_ref, o_ref, h_ref):
    # x_ref:   VMEM (TB, C, HW)     activations in natural NCHW(-flattened) layout
    # wc_ref:  SMEM (F, C)          1x1 conv weight (scalars)
    # bias_ref:SMEM (F,)            conv bias (scalars)
    # wfc_ref: VMEM (F*HW, O_pad)   fc weight = fc_w.T, zero-padded on O
    # o_ref:   VMEM (TB, O_pad)     output tile (lane-dense, unmasked stores)
    # h_ref:   VMEM (TB, F*HW)      scratch: post-activation features (dot dtype)
    C = x_ref.shape[1]
    HW = x_ref.shape[2]
    F_ = wc_ref.shape[0]

    # 1x1 conv + bias + LeakyReLU(0.1), one filter plane at a time (VPU work).
    # Channel planes are re-loaded per filter so only one (TB, HW) value is
    # live at a time -> bounded vreg pressure at any TB.
    for f in range(F_):                       # static unroll, F is small
        h = x_ref[:, 0, :] * wc_ref[f, 0]
        for c in range(1, C):
            h = h + x_ref[:, c, :] * wc_ref[f, c]
        h = h + bias_ref[f]
        h = jnp.maximum(h, 0.1 * h)           # LeakyReLU(0.1): 2 VALU ops
        # Column block [f*HW:(f+1)*HW] matches PyTorch's (F, H, W) flatten order.
        h_ref[:, f * HW:(f + 1) * HW] = h.astype(h_ref.dtype)

    # Single fused MXU matmul: (TB, F*HW) x (F*HW, O_pad) -> (TB, O_pad).
    o_ref[...] = jnp.dot(
        h_ref[...], wfc_ref[...], preferred_element_type=jnp.float32
    ).astype(o_ref.dtype)


def head_forward(x_nchw, conv_w, conv_b, fc_w, *, dot_dtype=jnp.bfloat16):
    """x_nchw: (B, C, H, W); conv_w: (F, C, 1, 1); conv_b: (F,); fc_w: (O, F*H*W)."""
    B, C, H, W = x_nchw.shape
    F_ = conv_w.shape[0]
    O = fc_w.shape[0]
    HW = H * W
    K = F_ * HW

    O_pad = _round_up(O, 128)                 # lane-dense output stores
    TB = _pick_batch_tile(B)                  # multiple of 8 sublanes (f32 layout)
    B_pad = _round_up(B, TB)

    # Activation: contiguous reshape only (no transpose -> no extra HBM pass);
    # pad batch rows only when needed.
    x = x_nchw.reshape(B, C, HW)
    if B_pad != B:
        x = jnp.pad(x, ((0, B_pad - B), (0, 0), (0, 0)))

    # Conv params as SMEM scalars.
    wc = conv_w.reshape(F_, C)
    bias = conv_b.reshape(F_)

    # fc weight (O, F*HW) -> (F*HW, O_pad).  Rows are already in PyTorch's
    # (F, H, W) flatten order; cast to the dot dtype (bf16 halves VMEM/DMA
    # bytes and MXU passes on v6e/v7x) and zero-pad the output lanes.
    wfc = jnp.transpose(fc_w).astype(dot_dtype)
    if O_pad != O:
        wfc = jnp.pad(wfc, ((0, 0), (0, O_pad - O)))

    # Right-sized VMEM budget: double-buffered tiles + resident scratch + headroom.
    xb = jnp.dtype(x_nchw.dtype).itemsize
    db = jnp.dtype(dot_dtype).itemsize
    x_tile_bytes = TB * C * HW * xb
    wfc_bytes = K * O_pad * db
    out_tile_bytes = TB * O_pad * xb
    h_buf_bytes = TB * K * db
    est = 2 * x_tile_bytes + 2 * wfc_bytes + 2 * out_tile_bytes + h_buf_bytes
    vmem_limit = int(min(est + 4 * 1024 * 1024, 56 * 1024 * 1024))

    out = pl.pallas_call(
        head_kernel,
        out_shape=jax.ShapeDtypeStruct((B_pad, O_pad), x_nchw.dtype),
        grid=(B_pad // TB,),
        in_specs=[
            pl.BlockSpec((TB, C, HW), lambda b: (b, 0, 0)),
            pl.BlockSpec(memory_space=pltpu.MemorySpace.SMEM),
            pl.BlockSpec(memory_space=pltpu.MemorySpace.SMEM),
            pl.BlockSpec((K, O_pad), lambda b: (0, 0)),   # grid-invariant weight
        ],
        out_specs=pl.BlockSpec((TB, O_pad), lambda b: (b, 0)),
        scratch_shapes=[pltpu.VMEM((TB, K), dot_dtype)],
        compiler_params=pltpu.CompilerParams(
            dimension_semantics=("parallel",),
            vmem_limit_bytes=vmem_limit),
    )(x, wc, bias, wfc)

    # Strip batch/output padding.
    return out[:B, :O]


def head_reference(x_nchw, conv_w, conv_b, fc_w):
    """Pure-JAX reference mirroring the PyTorch forward."""
    B, C, H, W = x_nchw.shape
    F_ = conv_w.shape[0]
    wc = conv_w.reshape(F_, C)
    h = jnp.einsum('fc,bchw->bfhw', wc, x_nchw) + conv_b[None, :, None, None]
    h = jnp.where(h > 0, h, 0.1 * h)                      # LeakyReLU(0.1)
    h = h.reshape(B, F_ * H * W)                          # (F, H, W) flatten order
    return h @ fc_w.T


if __name__ == "__main__":
    # Small shapes consistent with the module: input_size = (C, H, W)
    B, C, H, W = 2, 4, 8, 8
    out_filters = 4
    outputs = 3

    key = jax.random.PRNGKey(0)
    k1, k2, k3, k4 = jax.random.split(key, 4)

    x = jax.random.normal(k1, (B, C, H, W), dtype=jnp.float32)
    conv_w = jax.random.normal(k2, (out_filters, C, 1, 1), dtype=jnp.float32) * 0.1
    conv_b = jax.random.normal(k3, (out_filters,), dtype=jnp.float32) * 0.1
    fc_w = jax.random.normal(k4, (outputs, out_filters * H * W), dtype=jnp.float32) * 0.05

    head_fn = jax.jit(head_forward, static_argnames=("dot_dtype",))
    ref = head_reference(x, conv_w, conv_b, fc_w)

    # Exact f32-at-the-dot path: tight tolerance.
    out_f32 = jax.block_until_ready(
        head_fn(x, conv_w, conv_b, fc_w, dot_dtype=jnp.float32))
    assert np.allclose(np.asarray(out_f32), np.asarray(ref), rtol=1e-5, atol=1e-5), \
        "f32 Pallas output mismatch vs reference"

    # Default bf16-at-the-dot path (native MXU dtype on v6e/v7x): loose tolerance.
    out_bf16 = jax.block_until_ready(
        head_fn(x, conv_w, conv_b, fc_w, dot_dtype=jnp.bfloat16))
    assert np.allclose(np.asarray(out_bf16), np.asarray(ref), rtol=2e-2, atol=2e-2), \
        "bf16-dot Pallas output mismatch vs reference"

    print("KERNEL_OK")
</pallas_src>

<mosaic_0001>
module attributes {stable_mosaic.version = 11 : i64} {
  func.func @head_kernel(%arg0: i32, %arg1: memref<8x4x64xf32, #tpu.memory_space<vmem>>, %arg2: memref<4x4xf32, #tpu.memory_space<smem>>, %arg3: memref<4xf32, #tpu.memory_space<smem>>, %arg4: memref<256x128xf32, #tpu.memory_space<vmem>>, %arg5: memref<8x128xf32, #tpu.memory_space<vmem>>, %arg6: memref<8x256xf32, #tpu.memory_space<vmem>>) attributes {dimension_semantics = [#tpu.dimension_semantics<parallel>], iteration_bounds = array<i64: 1>, scalar_prefetch = 0 : i64, scratch_operands = 1 : i64, tpu.core_type = #tpu.core_type<tc>, window_params = [{transform_indices = @transform_0, window_bounds = array<i64: 8, 4, 64>}, {transform_indices = @transform_1, window_bounds = array<i64: 4, 4>}, {transform_indices = @transform_2, window_bounds = array<i64: 4>}, {pipeline_mode = #tpu.pipeline_mode<synchronous>, transform_indices = @transform_3, window_bounds = array<i64: 256, 128>}, {transform_indices = @transform_4, window_bounds = array<i64: 8, 128>}]} {
    %c0 = arith.constant 0 : index
    %c0_0 = arith.constant 0 : index
    %c0_1 = arith.constant 0 : index
    %0 = vector.load %arg1[%c0, %c0_0, %c0_1] : memref<8x4x64xf32, #tpu.memory_space<vmem>>, vector<8x1x64xf32>
    %1 = vector.shape_cast %0 : vector<8x1x64xf32> to vector<8x64xf32>
    %c0_2 = arith.constant 0 : index
    %c0_3 = arith.constant 0 : index
    %2 = memref.load %arg2[%c0_2, %c0_3] : memref<4x4xf32, #tpu.memory_space<smem>>
    %3 = vector.broadcast %2 : f32 to vector<8x64xf32>
    %4 = arith.mulf %1, %3 : vector<8x64xf32>
    %c0_4 = arith.constant 0 : index
    %c1 = arith.constant 1 : index
    %c0_5 = arith.constant 0 : index
    %5 = vector.load %arg1[%c0_4, %c1, %c0_5] : memref<8x4x64xf32, #tpu.memory_space<vmem>>, vector<8x1x64xf32>
    %6 = vector.shape_cast %5 : vector<8x1x64xf32> to vector<8x64xf32>
    %c0_6 = arith.constant 0 : index
    %c1_7 = arith.constant 1 : index
    %7 = memref.load %arg2[%c0_6, %c1_7] : memref<4x4xf32, #tpu.memory_space<smem>>
    %8 = vector.broadcast %7 : f32 to vector<8x64xf32>
    %9 = arith.mulf %6, %8 : vector<8x64xf32>
    %10 = arith.addf %4, %9 : vector<8x64xf32>
    %c0_8 = arith.constant 0 : index
    %c2 = arith.constant 2 : index
    %c0_9 = arith.constant 0 : index
    %11 = vector.load %arg1[%c0_8, %c2, %c0_9] : memref<8x4x64xf32, #tpu.memory_space<vmem>>, vector<8x1x64xf32>
    %12 = vector.shape_cast %11 : vector<8x1x64xf32> to vector<8x64xf32>
    %c0_10 = arith.constant 0 : index
    %c2_11 = arith.constant 2 : index
    %13 = memref.load %arg2[%c0_10, %c2_11] : memref<4x4xf32, #tpu.memory_space<smem>>
    %14 = vector.broadcast %13 : f32 to vector<8x64xf32>
    %15 = arith.mulf %12, %14 : vector<8x64xf32>
    %16 = arith.addf %10, %15 : vector<8x64xf32>
    %c0_12 = arith.constant 0 : index
    %c3 = arith.constant 3 : index
    %c0_13 = arith.constant 0 : index
    %17 = vector.load %arg1[%c0_12, %c3, %c0_13] : memref<8x4x64xf32, #tpu.memory_space<vmem>>, vector<8x1x64xf32>
    %18 = vector.shape_cast %17 : vector<8x1x64xf32> to vector<8x64xf32>
    %c0_14 = arith.constant 0 : index
    %c3_15 = arith.constant 3 : index
    %19 = memref.load %arg2[%c0_14, %c3_15] : memref<4x4xf32, #tpu.memory_space<smem>>
    %20 = vector.broadcast %19 : f32 to vector<8x64xf32>
    %21 = arith.mulf %18, %20 : vector<8x64xf32>
    %22 = arith.addf %16, %21 : vector<8x64xf32>
    %c0_16 = arith.constant 0 : index
    %23 = memref.load %arg3[%c0_16] : memref<4xf32, #tpu.memory_space<smem>>
    %24 = vector.broadcast %23 : f32 to vector<8x64xf32>
    %25 = arith.addf %22, %24 : vector<8x64xf32>
    %cst = arith.constant 1.000000e-01 : f32
    %26 = vector.broadcast %cst : f32 to vector<8x64xf32>
    %27 = arith.mulf %26, %25 : vector<8x64xf32>
    %28 = arith.maximumf %25, %27 : vector<8x64xf32>
    %c0_17 = arith.constant 0 : index
    %c0_18 = arith.constant 0 : index
    %29 = vector.load %arg6[%c0_17, %c0_18] : memref<8x256xf32, #tpu.memory_space<vmem>>, vector<8x64xf32>
    tpu.vector_store %arg6[%c0_17, %c0_18], %28 {strides = array<i32>} : memref<8x256xf32, #tpu.memory_space<vmem>>, vector<8x64xf32>,
    %c0_19 = arith.constant 0 : index
    %c0_20 = arith.constant 0 : index
    %c0_21 = arith.constant 0 : index
    %30 = vector.load %arg1[%c0_19, %c0_20, %c0_21] : memref<8x4x64xf32, #tpu.memory_space<vmem>>, vector<8x1x64xf32>
    %31 = vector.shape_cast %30 : vector<8x1x64xf32> to vector<8x64xf32>
    %c1_22 = arith.constant 1 : index
    %c0_23 = arith.constant 0 : index
    %32 = memref.load %arg2[%c1_22, %c0_23] : memref<4x4xf32, #tpu.memory_space<smem>>
    %33 = vector.broadcast %32 : f32 to vector<8x64xf32>
    %34 = arith.mulf %31, %33 : vector<8x64xf32>
    %c0_24 = arith.constant 0 : index
    %c1_25 = arith.constant 1 : index
    %c0_26 = arith.constant 0 : index
    %35 = vector.load %arg1[%c0_24, %c1_25, %c0_26] : memref<8x4x64xf32, #tpu.memory_space<vmem>>, vector<8x1x64xf32>
    %36 = vector.shape_cast %35 : vector<8x1x64xf32> to vector<8x64xf32>
    %c1_27 = arith.constant 1 : index
    %c1_28 = arith.constant 1 : index
    %37 = memref.load %arg2[%c1_27, %c1_28] : memref<4x4xf32, #tpu.memory_space<smem>>
    %38 = vector.broadcast %37 : f32 to vector<8x64xf32>
    %39 = arith.mulf %36, %38 : vector<8x64xf32>
    %40 = arith.addf %34, %39 : vector<8x64xf32>
    %c0_29 = arith.constant 0 : index
    %c2_30 = arith.constant 2 : index
    %c0_31 = arith.constant 0 : index
    %41 = vector.load %arg1[%c0_29, %c2_30, %c0_31] : memref<8x4x64xf32, #tpu.memory_space<vmem>>, vector<8x1x64xf32>
    %42 = vector.shape_cast %41 : vector<8x1x64xf32> to vector<8x64xf32>
    %c1_32 = arith.constant 1 : index
    %c2_33 = arith.constant 2 : index
    %43 = memref.load %arg2[%c1_32, %c2_33] : memref<4x4xf32, #tpu.memory_space<smem>>
    %44 = vector.broadcast %43 : f32 to vector<8x64xf32>
    %45 = arith.mulf %42, %44 : vector<8x64xf32>
    %46 = arith.addf %40, %45 : vector<8x64xf32>
    %c0_34 = arith.constant 0 : index
    %c3_35 = arith.constant 3 : index
    %c0_36 = arith.constant 0 : index
    %47 = vector.load %arg1[%c0_34, %c3_35, %c0_36] : memref<8x4x64xf32, #tpu.memory_space<vmem>>, vector<8x1x64xf32>
    %48 = vector.shape_cast %47 : vector<8x1x64xf32> to vector<8x64xf32>
    %c1_37 = arith.constant 1 : index
    %c3_38 = arith.constant 3 : index
    %49 = memref.load %arg2[%c1_37, %c3_38] : memref<4x4xf32, #tpu.memory_space<smem>>
    %50 = vector.broadcast %49 : f32 to vector<8x64xf32>
    %51 = arith.mulf %48, %50 : vector<8x64xf32>
    %52 = arith.addf %46, %51 : vector<8x64xf32>
    %c1_39 = arith.constant 1 : index
    %53 = memref.load %arg3[%c1_39] : memref<4xf32, #tpu.memory_space<smem>>
    %54 = vector.broadcast %53 : f32 to vector<8x64xf32>
    %55 = arith.addf %52, %54 : vector<8x64xf32>
    %cst_40 = arith.constant 1.000000e-01 : f32
    %56 = vector.broadcast %cst_40 : f32 to vector<8x64xf32>
    %57 = arith.mulf %56, %55 : vector<8x64xf32>
    %58 = arith.maximumf %55, %57 : vector<8x64xf32>
    %c0_41 = arith.constant 0 : index
    %c64 = arith.constant 64 : index
    %59 = vector.load %arg6[%c0_41, %c64] : memref<8x256xf32, #tpu.memory_space<vmem>>, vector<8x64xf32>
    tpu.vector_store %arg6[%c0_41, %c64], %58 {strides = array<i32>} : memref<8x256xf32, #tpu.memory_space<vmem>>, vector<8x64xf32>,
    %c0_42 = arith.constant 0 : index
    %c0_43 = arith.constant 0 : index
    %c0_44 = arith.constant 0 : index
    %60 = vector.load %arg1[%c0_42, %c0_43, %c0_44] : memref<8x4x64xf32, #tpu.memory_space<vmem>>, vector<8x1x64xf32>
    %61 = vector.shape_cast %60 : vector<8x1x64xf32> to vector<8x64xf32>
    %c2_45 = arith.constant 2 : index
    %c0_46 = arith.constant 0 : index
    %62 = memref.load %arg2[%c2_45, %c0_46] : memref<4x4xf32, #tpu.memory_space<smem>>
    %63 = vector.broadcast %62 : f32 to vector<8x64xf32>
    %64 = arith.mulf %61, %63 : vector<8x64xf32>
    %c0_47 = arith.constant 0 : index
    %c1_48 = arith.constant 1 : index
    %c0_49 = arith.constant 0 : index
    %65 = vector.load %arg1[%c0_47, %c1_48, %c0_49] : memref<8x4x64xf32, #tpu.memory_space<vmem>>, vector<8x1x64xf32>
    %66 = vector.shape_cast %65 : vector<8x1x64xf32> to vector<8x64xf32>
    %c2_50 = arith.constant 2 : index
    %c1_51 = arith.constant 1 : index
    %67 = memref.load %arg2[%c2_50, %c1_51] : memref<4x4xf32, #tpu.memory_space<smem>>
    %68 = vector.broadcast %67 : f32 to vector<8x64xf32>
    %69 = arith.mulf %66, %68 : vector<8x64xf32>
    %70 = arith.addf %64, %69 : vector<8x64xf32>
    %c0_52 = arith.constant 0 : index
    %c2_53 = arith.constant 2 : index
    %c0_54 = arith.constant 0 : index
    %71 = vector.load %arg1[%c0_52, %c2_53, %c0_54] : memref<8x4x64xf32, #tpu.memory_space<vmem>>, vector<8x1x64xf32>
    %72 = vector.shape_cast %71 : vector<8x1x64xf32> to vector<8x64xf32>
    %c2_55 = arith.constant 2 : index
    %c2_56 = arith.constant 2 : index
    %73 = memref.load %arg2[%c2_55, %c2_56] : memref<4x4xf32, #tpu.memory_space<smem>>
    %74 = vector.broadcast %73 : f32 to vector<8x64xf32>
    %75 = arith.mulf %72, %74 : vector<8x64xf32>
    %76 = arith.addf %70, %75 : vector<8x64xf32>
    %c0_57 = arith.constant 0 : index
    %c3_58 = arith.constant 3 : index
    %c0_59 = arith.constant 0 : index
    %77 = vector.load %arg1[%c0_57, %c3_58, %c0_59] : memref<8x4x64xf32, #tpu.memory_space<vmem>>, vector<8x1x64xf32>
    %78 = vector.shape_cast %77 : vector<8x1x64xf32> to vector<8x64xf32>
    %c2_60 = arith.constant 2 : index
    %c3_61 = arith.constant 3 : index
    %79 = memref.load %arg2[%c2_60, %c3_61] : memref<4x4xf32, #tpu.memory_space<smem>>
    %80 = vector.broadcast %79 : f32 to vector<8x64xf32>
    %81 = arith.mulf %78, %80 : vector<8x64xf32>
    %82 = arith.addf %76, %81 : vector<8x64xf32>
    %c2_62 = arith.constant 2 : index
    %83 = memref.load %arg3[%c2_62] : memref<4xf32, #tpu.memory_space<smem>>
    %84 = vector.broadcast %83 : f32 to vector<8x64xf32>
    %85 = arith.addf %82, %84 : vector<8x64xf32>
    %cst_63 = arith.constant 1.000000e-01 : f32
    %86 = vector.broadcast %cst_63 : f32 to vector<8x64xf32>
    %87 = arith.mulf %86, %85 : vector<8x64xf32>
    %88 = arith.maximumf %85, %87 : vector<8x64xf32>
    %c0_64 = arith.constant 0 : index
    %c128 = arith.constant 128 : index
    %89 = vector.load %arg6[%c0_64, %c128] : memref<8x256xf32, #tpu.memory_space<vmem>>, vector<8x64xf32>
    tpu.vector_store %arg6[%c0_64, %c128], %88 {strides = array<i32>} : memref<8x256xf32, #tpu.memory_space<vmem>>, vector<8x64xf32>,
    %c0_65 = arith.constant 0 : index
    %c0_66 = arith.constant 0 : index
    %c0_67 = arith.constant 0 : index
    %90 = vector.load %arg1[%c0_65, %c0_66, %c0_67] : memref<8x4x64xf32, #tpu.memory_space<vmem>>, vector<8x1x64xf32>
    %91 = vector.shape_cast %90 : vector<8x1x64xf32> to vector<8x64xf32>
    %c3_68 = arith.constant 3 : index
    %c0_69 = arith.constant 0 : index
    %92 = memref.load %arg2[%c3_68, %c0_69] : memref<4x4xf32, #tpu.memory_space<smem>>
    %93 = vector.broadcast %92 : f32 to vector<8x64xf32>
    %94 = arith.mulf %91, %93 : vector<8x64xf32>
    %c0_70 = arith.constant 0 : index
    %c1_71 = arith.constant 1 : index
    %c0_72 = arith.constant 0 : index
    %95 = vector.load %arg1[%c0_70, %c1_71, %c0_72] : memref<8x4x64xf32, #tpu.memory_space<vmem>>, vector<8x1x64xf32>
    %96 = vector.shape_cast %95 : vector<8x1x64xf32> to vector<8x64xf32>
    %c3_73 = arith.constant 3 : index
    %c1_74 = arith.constant 1 : index
    %97 = memref.load %arg2[%c3_73, %c1_74] : memref<4x4xf32, #tpu.memory_space<smem>>
    %98 = vector.broadcast %97 : f32 to vector<8x64xf32>
    %99 = arith.mulf %96, %98 : vector<8x64xf32>
    %100 = arith.addf %94, %99 : vector<8x64xf32>
    %c0_75 = arith.constant 0 : index
    %c2_76 = arith.constant 2 : index
    %c0_77 = arith.constant 0 : index
    %101 = vector.load %arg1[%c0_75, %c2_76, %c0_77] : memref<8x4x64xf32, #tpu.memory_space<vmem>>, vector<8x1x64xf32>
    %102 = vector.shape_cast %101 : vector<8x1x64xf32> to vector<8x64xf32>
    %c3_78 = arith.constant 3 : index
    %c2_79 = arith.constant 2 : index
    %103 = memref.load %arg2[%c3_78, %c2_79] : memref<4x4xf32, #tpu.memory_space<smem>>
    %104 = vector.broadcast %103 : f32 to vector<8x64xf32>
    %105 = arith.mulf %102, %104 : vector<8x64xf32>
    %106 = arith.addf %100, %105 : vector<8x64xf32>
    %c0_80 = arith.constant 0 : index
    %c3_81 = arith.constant 3 : index
    %c0_82 = arith.constant 0 : index
    %107 = vector.load %arg1[%c0_80, %c3_81, %c0_82] : memref<8x4x64xf32, #tpu.memory_space<vmem>>, vector<8x1x64xf32>
    %108 = vector.shape_cast %107 : vector<8x1x64xf32> to vector<8x64xf32>
    %c3_83 = arith.constant 3 : index
    %c3_84 = arith.constant 3 : index
    %109 = memref.load %arg2[%c3_83, %c3_84] : memref<4x4xf32, #tpu.memory_space<smem>>
    %110 = vector.broadcast %109 : f32 to vector<8x64xf32>
    %111 = arith.mulf %108, %110 : vector<8x64xf32>
    %112 = arith.addf %106, %111 : vector<8x64xf32>
    %c3_85 = arith.constant 3 : index
    %113 = memref.load %arg3[%c3_85] : memref<4xf32, #tpu.memory_space<smem>>
    %114 = vector.broadcast %113 : f32 to vector<8x64xf32>
    %115 = arith.addf %112, %114 : vector<8x64xf32>
    %cst_86 = arith.constant 1.000000e-01 : f32
    %116 = vector.broadcast %cst_86 : f32 to vector<8x64xf32>
    %117 = arith.mulf %116, %115 : vector<8x64xf32>
    %118 = arith.maximumf %115, %117 : vector<8x64xf32>
    %c0_87 = arith.constant 0 : index
    %c192 = arith.constant 192 : index
    %119 = vector.load %arg6[%c0_87, %c192] : memref<8x256xf32, #tpu.memory_space<vmem>>, vector<8x64xf32>
    tpu.vector_store %arg6[%c0_87, %c192], %118 {strides = array<i32>} : memref<8x256xf32, #tpu.memory_space<vmem>>, vector<8x64xf32>,
    %c0_88 = arith.constant 0 : index
    %c0_89 = arith.constant 0 : index
    %120 = vector.load %arg6[%c0_88, %c0_89] : memref<8x256xf32, #tpu.memory_space<vmem>>, vector<8x256xf32>
    %c0_90 = arith.constant 0 : index
    %c0_91 = arith.constant 0 : index
    %121 = vector.load %arg4[%c0_90, %c0_91] : memref<256x128xf32, #tpu.memory_space<vmem>>, vector<256x128xf32>
    %cst_92 = arith.constant dense<0.000000e+00> : vector<8x128xf32>
    %122 = tpu.matmul %120, %121, %cst_92 {dimension_numbers = #tpu.dot_dimension_numbers<[1], [0], [0], [1], [0, 0, 1, 1], [], []>} : vector<8x256xf32>, vector<256x128xf32>, vector<8x128xf32> -> vector<8x128xf32>
    %c0_93 = arith.constant 0 : index
    %c0_94 = arith.constant 0 : index
    %123 = vector.load %arg5[%c0_93, %c0_94] : memref<8x128xf32, #tpu.memory_space<vmem>>, vector<8x128xf32>
    tpu.vector_store %arg5[%c0_93, %c0_94], %122 {strides = array<i32>} : memref<8x128xf32, #tpu.memory_space<vmem>>, vector<8x128xf32>,
    return
  }
  func.func @transform_0(%arg0: i32) -> (i32, i32, i32) {
    %c0_i32 = arith.constant 0 : i32
    %c0_i32_0 = arith.constant 0 : i32
    %c0_i32_1 = arith.constant 0 : i32
    return %arg0, %c0_i32, %c0_i32_0 : i32, i32, i32
  }
  func.func @transform_1(%arg0: i32) -> (i32, i32) {
    %c0_i32 = arith.constant 0 : i32
    %c0_i32_0 = arith.constant 0 : i32
    %c0_i32_1 = arith.constant 0 : i32
    return %c0_i32, %c0_i32_0 : i32, i32
  }
  func.func @transform_2(%arg0: i32) -> i32 {
    %c0_i32 = arith.constant 0 : i32
    %c0_i32_0 = arith.constant 0 : i32
    return %c0_i32 : i32
  }
  func.func @transform_3(%arg0: i32) -> (i32, i32) {
    %c0_i32 = arith.constant 0 : i32
    %c0_i32_0 = arith.constant 0 : i32
    %c0_i32_1 = arith.constant 0 : i32
    return %c0_i32, %c0_i32_0 : i32, i32
  }
  func.func @transform_4(%arg0: i32) -> (i32, i32) {
    %c0_i32 = arith.constant 0 : i32
    %c0_i32_0 = arith.constant 0 : i32
    return %arg0, %c0_i32 : i32, i32
  }
}

</mosaic_0001>

<bundles_post_ra>
// kernel: head_forward.1
= control target key start
LH: loop header
LB: loop body
LE: loop exit
PB: predicated region body
PF: predicated region fallthrough
CT: control target
= control target key end

     0   :  { %9 = vsyncpa [#allocation4], 0  ;;  %s1482_s0 = inlined_call_operand.vmem [shape: f32[8,4,64], index: 0, kind: input, shape index: {}]   ;;  %s1483_s1 = inlined_call_operand.vmem [shape: f32[4,4], index: 1, kind: input, shape index: {}]   ;;  %s1484_s2 = inlined_call_operand.vmem [shape: f32[4], index: 2, kind: input, shape index: {}]   ;;  %s1485_s3 = inlined_call_operand.vmem [shape: f32[256,128], index: 3, kind: input, shape index: {}]   ;;  %s1486_s4 = inlined_call_operand.vmem [shape: f32[8,128], index: 4, kind: output, shape index: {}]  }
   0x1   :  { %s19_s17 = sshll.u32 %s1483_s1, 4  ;;  %s20_s17 = int_to_ptr.vmem [resolvable:$true] %s19_s17 }
   0x2   :  { %10 = vsyncpa [#allocation6], 0  ;;  %s29_s20 = sshll.u32 %s1484_s2, 4  ;;  %s838_s21 = scalar_lea.vmem %s20_s17, 64  ;;  %s30_s20 = int_to_ptr.vmem [resolvable:$true] %s29_s20 }
   0x3   :  { %p839_p0 = scmp.ne.s32.totalorder %s20_s17, %s838_s21  ;;  %p843_p1 = scmp.lt.s32.totalorder %s20_s17, %s20_s17 }
   0x4   :  { %p844_p2 = scmp.lt.s32.totalorder %s838_s21, %s838_s21 }
   0x6   :  { %p845_p3 = por %p844_p2, %p843_p1 }
   0x8   :  { %p846_p4 = pnand %p845_p3, %p839_p0 }
   0xa   :  { %849 = shalt.err (!%p846_p4)
}
   0xb   :  { %s866_s22 = smov [#allocation3]   ;;  %s850_s23 = scalar_lea.vmem %s30_s20, 16 }
   0xc   :  { %22 = dma.vmem_to_smem %s20_s17, 64, %s866_s22, [#allocation4]  }
   0xd   :  { %p851_p5 = scmp.ne.s32.totalorder %s30_s20, %s850_s23  ;;  %p855_p6 = scmp.lt.s32.totalorder %s30_s20, %s30_s20 }
   0xe   :  { %p856_p7 = scmp.lt.s32.totalorder %s850_s23, %s850_s23 }
  0x10   :  { %p857_p8 = por %p856_p7, %p855_p6 }
  0x12   :  { %p858_p9 = pnand %p857_p8, %p851_p5 }
  0x14   :  { %861 = shalt.err (!%p858_p9)
}
  0x15   :  { %s867_s1 = smov [#allocation5]  }
  0x16   :  { %32 = dma.vmem_to_smem %s30_s20, 16, %s867_s1, [#allocation6]  }
  0x17   :  { %862 = dma.done.wait [#allocation4], 64  }
  0x18   :  { %863 = vsyncadd [#allocation4], 4294967232 }
  0x19   :  { %864 = dma.done.wait [#allocation6], 16  }
  0x1a   :  { %865 = vsyncadd [#allocation6], 4294967280 }
  0x1b   :  { %41 = sfence }
  0x1c   :  { %v657_v0 = vld [vmem:[%s1485_s3 + $0x80] sm:$0xff]  ;;  %v658_v1 = vld [vmem:[%s1485_s3 + $0x88] sm:$0xff]  ;;  %s763_s27 = sld [smem:[#allocation3 + $0x180]]  ;;  %s764_s6 = sld [smem:[#allocation3 + $0x181]]  ;;  %v495_v7 = vld [vmem:[%s1482_s0 + $0x10] sm:$0x1] }
  0x1d   :  { %v803_v2 = vpack.c.bf16 %v658_v1, %v657_v0  ;;  %v491_v3 = vld [vmem:[%s1482_s0] sm:$0x1]  ;;  %v492_v4 = vld [vmem:[%s1482_s0 + $0x4] sm:$0x1]  ;;  %v493_v5 = vld [vmem:[%s1482_s0 + $0x8] sm:$0x1] }
  0x1e   :  { %v494_v6 = vld [vmem:[%s1482_s0 + $0xc] sm:$0x1]  ;;  %v496_v8 = vld [vmem:[%s1482_s0 + $0x14] sm:$0x1]  ;;  %v497_v9 = vld [vmem:[%s1482_s0 + $0x18] sm:$0x1] }
  0x1f   :  { %804 = vmatprep.subr.bf16.mxu0 %v803_v2  ;;  %v498_v10 = vld [vmem:[%s1482_s0 + $0x1c] sm:$0x1]  ;;  %v509_v12 = vld [vmem:[%s1482_s0 + $0x1] sm:$0x1]  ;;  %v510_v13 = vld [vmem:[%s1482_s0 + $0x5] sm:$0x1] }
  0x20   :  { %s936_s23 = sld [smem:[#allocation3 + $0x182]]  ;;  %v511_v15 = vld [vmem:[%s1482_s0 + $0x9] sm:$0x1]  ;;  %v512_v16 = vld [vmem:[%s1482_s0 + $0xd] sm:$0x1]  ;;  %s967_s15 = sld [smem:[#allocation5 + $0x3]] }
  0x21   :  { %v513_v17 = vld [vmem:[%s1482_s0 + $0x11] sm:$0x1]  ;;  %v514_v22 = vld [vmem:[%s1482_s0 + $0x15] sm:$0x1]  ;;  %v515_v23 = vld [vmem:[%s1482_s0 + $0x19] sm:$0x1] }
  0x22   :  { %v500_v11 = vstv %s763_s27  ;;  %v516_v24 = vld [vmem:[%s1482_s0 + $0x1d] sm:$0x1]  ;;  %v518_v28 = vstv %s764_s6  ;;  %v535_v33 = vld [vmem:[%s1482_s0 + $0x2] sm:$0x1]  ;;  %s965_s6 = sld [smem:[#allocation3 + $0x183]]  ;;  %s975_s20 = sld [smem:[#allocation3 + $0x80]] }
  0x23   :  { %v501_v14 = vmul.f32 %v500_v11, %v491_v3  ;;  %v502_v18 = vmul.f32 %v500_v11, %v492_v4  ;;  %v503_v19 = vmul.f32 %v500_v11, %v493_v5  ;;  %v504_v20 = vmul.f32 %v500_v11, %v494_v6  ;;  %v536_v34 = vld [vmem:[%s1482_s0 + $0x6] sm:$0x1]  ;;  %v537_v39 = vld [vmem:[%s1482_s0 + $0xa] sm:$0x1]  ;;  %v538_v41 = vld [vmem:[%s1482_s0 + $0xe] sm:$0x1] }
  0x24   :  { %v505_v21 = vmul.f32 %v500_v11, %v495_v7  ;;  %v506_v25 = vmul.f32 %v500_v11, %v496_v8  ;;  %v507_v26 = vmul.f32 %v500_v11, %v497_v9  ;;  %v508_v27 = vmul.f32 %v500_v11, %v498_v10  ;;  %v539_v42 = vld [vmem:[%s1482_s0 + $0x12] sm:$0x1]  ;;  %v540_v47 = vld [vmem:[%s1482_s0 + $0x16] sm:$0x1]  ;;  %v541_v48 = vld [vmem:[%s1482_s0 + $0x1a] sm:$0x1] }
  0x25   :  { %v519_v29 = vmul.f32 %v518_v28, %v509_v12  ;;  %v520_v30 = vmul.f32 %v518_v28, %v510_v13  ;;  %v521_v31 = vmul.f32 %v518_v28, %v511_v15  ;;  %v522_v32 = vmul.f32 %v518_v28, %v512_v16  ;;  %v542_v49 = vld [vmem:[%s1482_s0 + $0x1e] sm:$0x1]  ;;  %v561_v62 = vld [vmem:[%s1482_s0 + $0x3] sm:$0x1]  ;;  %v562_v63 = vld [vmem:[%s1482_s0 + $0x7] sm:$0x1] }
  0x26   :  { %v523_v35 = vmul.f32 %v518_v28, %v513_v17  ;;  %v524_v36 = vmul.f32 %v518_v28, %v514_v22  ;;  %v525_v37 = vmul.f32 %v518_v28, %v515_v23  ;;  %v526_v38 = vmul.f32 %v518_v28, %v516_v24  ;;  %v563_v3 = vld [vmem:[%s1482_s0 + $0xb] sm:$0x1]  ;;  %v564_v4 = vld [vmem:[%s1482_s0 + $0xf] sm:$0x1]  ;;  %v565_v5 = vld [vmem:[%s1482_s0 + $0x13] sm:$0x1] }
  0x27   :  { %v527_v40 = vadd.f32 %v519_v29, %v501_v14  ;;  %v528_v43 = vadd.f32 %v520_v30, %v502_v18  ;;  %v529_v44 = vadd.f32 %v521_v31, %v503_v19  ;;  %v530_v45 = vadd.f32 %v522_v32, %v504_v20  ;;  %v566_v10 = vld [vmem:[%s1482_s0 + $0x17] sm:$0x1]  ;;  %v567_v11 = vld [vmem:[%s1482_s0 + $0x1b] sm:$0x1]  ;;  %v568_v12 = vld [vmem:[%s1482_s0 + $0x1f] sm:$0x1] }
  0x28   :  { %v531_v46 = vadd.f32 %v523_v35, %v505_v21  ;;  %v532_v50 = vadd.f32 %v524_v36, %v506_v25  ;;  %v533_v51 = vadd.f32 %v525_v37, %v507_v26  ;;  %v534_v52 = vadd.f32 %v526_v38, %v508_v27  ;;  %v197_v38 = vld [vmem:[%s1482_s0 + $0x4] sm:$0x1]  ;;  %s1025_s21 = sld [smem:[#allocation3 + $0x81]]  ;;  %s1027_s22 = sld [smem:[#allocation3 + $0x82]] }
  0x29   :  { %v544_v53 = vstv %s936_s23  ;;  %v570_v14 = vstv %s965_s6  ;;  %v588_v15 = vstv %s967_s15  ;;  %v1014_v16 = vstv %s975_s20  ;;  %s868_s12 = smov 64   ;;  %s1167_s17 = sld [smem:[#allocation3 + $0x100]] }
  0x2a   :  { %v545_v54 = vmul.f32 %v544_v53, %v535_v33  ;;  %v546_v55 = vmul.f32 %v544_v53, %v536_v34  ;;  %v547_v56 = vmul.f32 %v544_v53, %v537_v39  ;;  %v548_v57 = vmul.f32 %v544_v53, %v538_v41  ;;  %v196_v33 = vld [vmem:[%s1482_s0] sm:$0x1]  ;;  %s1169_s18 = sld [smem:[#allocation3 + $0x101]]  ;;  %s1177_s24 = sld [smem:[#allocation3 + $0x102]] }
  0x2b   :  { %v549_v58 = vmul.f32 %v544_v53, %v539_v42  ;;  %v550_v59 = vmul.f32 %v544_v53, %v540_v47  ;;  %v551_v60 = vmul.f32 %v544_v53, %v541_v48  ;;  %v552_v61 = vmul.f32 %v544_v53, %v542_v49  ;;  %s1179_s25 = sld [smem:[#allocation3 + $0x103]]  ;;  %s1330_s14 = sld [smem:[#allocation3 + $0x1]] }
  0x2c   :  { %v553_v0 = vadd.f32 %v545_v54, %v527_v40  ;;  %v554_v1 = vadd.f32 %v546_v55, %v528_v43  ;;  %v555_v2 = vadd.f32 %v547_v56, %v529_v44  ;;  %v556_v6 = vadd.f32 %v548_v57, %v530_v45  ;;  %v198_v43 = vld [vmem:[%s1482_s0 + $0x8] sm:$0x1]  ;;  %s1332_s16 = sld [smem:[#allocation3 + $0x2]]  ;;  %s1425_s13 = sld [smem:[#allocation5]] }
  0x2d   :  { %v557_v7 = vadd.f32 %v549_v58, %v531_v46  ;;  %v558_v8 = vadd.f32 %v550_v59, %v532_v50  ;;  %v559_v9 = vadd.f32 %v551_v60, %v533_v51  ;;  %v560_v13 = vadd.f32 %v552_v61, %v534_v52  ;;  %v199_v60 = vld [vmem:[%s1482_s0 + $0xc] sm:$0x1]  ;;  %v200_v61 = vld [vmem:[%s1482_s0 + $0x10] sm:$0x1] }
  0x2e   :  { %v571_v17 = vmul.f32 %v570_v14, %v561_v62  ;;  %v572_v18 = vmul.f32 %v570_v14, %v562_v63  ;;  %v573_v19 = vmul.f32 %v570_v14, %v563_v3  ;;  %v574_v20 = vmul.f32 %v570_v14, %v564_v4  ;;  %v201_v62 = vld [vmem:[%s1482_s0 + $0x14] sm:$0x1]  ;;  %v203_v3 = vld [vmem:[%s1482_s0 + $0x1c] sm:$0x1] }
  0x2f   :  { %vm173_vm0 = vcmask 1041409   ;;  %v575_v21 = vmul.f32 %v570_v14, %v565_v5  ;;  %v576_v22 = vmul.f32 %v570_v14, %v566_v10  ;;  %v577_v23 = vmul.f32 %v570_v14, %v567_v11 }
  0x30   :  { %v578_v24 = vmul.f32 %v570_v14, %v568_v12  ;;  %vm176_vm1 = vcmask 1042434   ;;  %v579_v25 = vadd.f32 %v571_v17, %v553_v0  ;;  %v580_v26 = vadd.f32 %v572_v18, %v554_v1  ;;  %v215_v14 = vld [vmem:[%s1482_s0 + $0x5] sm:$0x1] }
  0x31   :  { %v581_v27 = vadd.f32 %v573_v19, %v555_v2  ;;  %v582_v28 = vadd.f32 %v574_v20, %v556_v6  ;;  %vm179_vm2 = vcmask 1043459   ;;  %v583_v29 = vadd.f32 %v575_v21, %v557_v7  ;;  %v202_v2 = vld [vmem:[%s1482_s0 + $0x18] sm:$0x1]  ;;  %v217_v21 = vld [vmem:[%s1482_s0 + $0xd] sm:$0x1] }
  0x32   :  { %v584_v30 = vadd.f32 %v576_v22, %v558_v8  ;;  %v585_v31 = vadd.f32 %v577_v23, %v559_v9  ;;  %v586_v32 = vadd.f32 %v578_v24, %v560_v13  ;;  %vm182_vm3 = vcmask 1044484   ;;  %v214_v9 = vld [vmem:[%s1482_s0 + $0x1] sm:$0x1]  ;;  %v218_v22 = vld [vmem:[%s1482_s0 + $0x11] sm:$0x1] }
  0x33   :  { %v589_v34 = vadd.f32 %v588_v15, %v579_v25  ;;  %v590_v35 = vadd.f32 %v588_v15, %v580_v26  ;;  %v591_v36 = vadd.f32 %v588_v15, %v581_v27  ;;  %v592_v37 = vadd.f32 %v588_v15, %v582_v28  ;;  %v219_v23 = vld [vmem:[%s1482_s0 + $0x15] sm:$0x1]  ;;  %v220_v26 = vld [vmem:[%s1482_s0 + $0x19] sm:$0x1]  ;;  %v221_v27 = vld [vmem:[%s1482_s0 + $0x1d] sm:$0x1] }
  0x34   :  { %vm185_vm4 = vcmask 1045509   ;;  %v593_v39 = vadd.f32 %v588_v15, %v583_v29  ;;  %v594_v40 = vadd.f32 %v588_v15, %v584_v30  ;;  %v595_v41 = vadd.f32 %v588_v15, %v585_v31 }
  0x35   :  { %v596_v42 = vadd.f32 %v588_v15, %v586_v32  ;;  %vm188_vm5 = vcmask 1046534   ;;  %v597_v44 = vmul.f32 0.1, %v589_v34  ;;  %v598_v45 = vmul.f32 0.1, %v590_v35 }
  0x36   :  { %v599_v46 = vmul.f32 0.1, %v591_v36  ;;  %v206_v47 = vmul.f32 %v1014_v16, %v196_v33  ;;  %vm191_vm6 = vcmask 1047559   ;;  %v600_v48 = vmul.f32 0.1, %v592_v37 }
  0x37   :  { %v601_v49 = vmul.f32 0.1, %v593_v39  ;;  %v602_v50 = vmul.f32 0.1, %v594_v40  ;;  %v1031_v51 = vmul.f32 %v1014_v16, %v197_v38  ;;  %v603_v52 = vmul.f32 0.1, %v595_v41 }
  0x38   :  { %v604_v53 = vmul.f32 0.1, %v596_v42  ;;  %v605_v54 = vmax.f32 %v589_v34, %v597_v44  ;;  %v606_v55 = vmax.f32 %v590_v35, %v598_v45  ;;  %v607_v56 = vmax.f32 %v591_v36, %v599_v46  ;;  %v216_v15 = vld [vmem:[%s1482_s0 + $0x9] sm:$0x1]  ;;  %v240_v34 = vld [vmem:[%s1482_s0 + $0x2] sm:$0x1] }
  0x39   :  { %v608_v57 = vmax.f32 %v592_v37, %v600_v48  ;;  %v609_v58 = vmax.f32 %v593_v39, %v601_v49  ;;  %v610_v59 = vmax.f32 %v594_v40, %v602_v50  ;;  %v611_v63 = vmax.f32 %v595_v41, %v603_v52  ;;  %v241_v38 = vld [vmem:[%s1482_s0 + $0x6] sm:$0x1]  ;;  %v243_v44 = vld [vmem:[%s1482_s0 + $0xe] sm:$0x1]  ;;  %v244_v45 = vld [vmem:[%s1482_s0 + $0x12] sm:$0x1] }
  0x3a   :  { %v612_v0 = vmax.f32 %v596_v42, %v604_v53  ;;  %v621_v1 = vrot.slane %v606_v55, 7  ;;  %v208_v4 = vmul.f32 %v1014_v16, %v198_v43  ;;  %v623_v5 = vrot.slane %v607_v56, 6  ;;  %v242_v43 = vld [vmem:[%s1482_s0 + $0xa] sm:$0x1]  ;;  %v246_v52 = vld [vmem:[%s1482_s0 + $0x1a] sm:$0x1] }
  0x3b   :  { %v625_v6 = vrot.slane %v608_v57, 5  ;;  %v627_v7 = vrot.slane %v609_v58, 4  ;;  %v629_v8 = vrot.slane %v610_v59, 3  ;;  %v631_v11 = vrot.slane %v611_v63, 2  ;;  %v247_v53 = vld [vmem:[%s1482_s0 + $0x1e] sm:$0x1] }
  0x3c   :  { %v622_v10 = vsel %vm173_vm0, %v621_v1, %v605_v54  ;;  %v633_v12 = vrot.slane %v612_v0, 1  ;;  %v209_v13 = vmul.f32 %v1014_v16, %v199_v60  ;;  %v210_v18 = vmul.f32 %v1014_v16, %v200_v61  ;;  %v266_v61 = vld [vmem:[%s1482_s0 + $0x3] sm:$0x1] }
  0x3d   :  { %v624_v17 = vsel %vm176_vm1, %v623_v5, %v622_v10  ;;  %v211_v19 = vmul.f32 %v1014_v16, %v201_v62  ;;  %v212_v20 = vmul.f32 %v1014_v16, %v202_v2  ;;  %v213_v25 = vmul.f32 %v1014_v16, %v203_v3  ;;  %v267_v62 = vld [vmem:[%s1482_s0 + $0x7] sm:$0x1]  ;;  %v659_v5 = vld [vmem:[%s1485_s3 + $0x90] sm:$0xff] }
  0x3e   :  { %v626_v24 = vsel %vm179_vm2, %v625_v6, %v624_v17  ;;  %v223_v28 = vstv %s1025_s21  ;;  %v249_v29 = vstv %s1027_s22  ;;  %s1091_s21 = sld [smem:[#allocation3 + $0x83]]  ;;  %s1093_s22 = sld [smem:[#allocation5 + $0x1]]  ;;  %v641_v63 = vld [vmem:[%s1485_s3] sm:$0xff]  ;;  %v660_v6 = vld [vmem:[%s1485_s3 + $0x98] sm:$0xff]  ;;  %vm194_vm7 = vcmask 523264  }
  0x3f   :  { %v628_v30 = vsel %vm182_vm3, %v627_v7, %v626_v24  ;;  %v224_v31 = vmul.f32 %v223_v28, %v214_v9  ;;  %v225_v32 = vmul.f32 %v223_v28, %v215_v14  ;;  %v226_v33 = vmul.f32 %v223_v28, %v216_v15 }
  0x40   :  { %v630_v16 = vsel %vm185_vm4, %v629_v8, %v628_v30  ;;  %v227_v35 = vmul.f32 %v223_v28, %v217_v21  ;;  %v228_v36 = vmul.f32 %v223_v28, %v218_v22  ;;  %v229_v37 = vmul.f32 %v223_v28, %v219_v23  ;;  %v273_v21 = vld [vmem:[%s1482_s0 + $0x1f] sm:$0x1] }
  0x41   :  { %v632_v39 = vsel %vm188_vm5, %v631_v11, %v630_v16  ;;  %v230_v40 = vmul.f32 %v223_v28, %v220_v26  ;;  %v231_v41 = vmul.f32 %v223_v28, %v221_v27  ;;  %v232_v42 = vadd.f32 %v224_v31, %v206_v47  ;;  %v245_v47 = vld [vmem:[%s1482_s0 + $0x16] sm:$0x1]  ;;  %v268_v11 = vld [vmem:[%s1482_s0 + $0xb] sm:$0x1] }
  0x42   :  { %v634_v46 = vsel %vm191_vm6, %v633_v12, %v632_v39  ;;  %v233_v48 = vadd.f32 %v225_v32, %v1031_v51  ;;  %v234_v49 = vadd.f32 %v226_v33, %v208_v4  ;;  %v235_v50 = vadd.f32 %v227_v35, %v209_v13  ;;  %v642_v4 = vld [vmem:[%s1485_s3 + $0x8] sm:$0xff]  ;;  %v270_v13 = vld [vmem:[%s1482_s0 + $0x13] sm:$0x1] }
  0x43   :  { %635 = vrot.lane.b32.xlu0 %v634_v46, %s868_s12  ;;  %v236_v54 = vadd.f32 %v228_v36, %v210_v18  ;;  %v237_v55 = vadd.f32 %v229_v37, %v211_v19  ;;  %v238_v51 = vadd.f32 %v230_v40, %v212_v20  ;;  %v239_v56 = vadd.f32 %v231_v41, %v213_v25  ;;  %v269_v12 = vld [vmem:[%s1482_s0 + $0xf] sm:$0x1]  ;;  %v271_v19 = vld [vmem:[%s1482_s0 + $0x17] sm:$0x1]  ;;  %v272_v20 = vld [vmem:[%s1482_s0 + $0x1b] sm:$0x1] }
  0x44   :  { %v250_v57 = vmul.f32 %v249_v29, %v240_v34  ;;  %v251_v58 = vmul.f32 %v249_v29, %v241_v38  ;;  %v252_v59 = vmul.f32 %v249_v29, %v242_v43  ;;  %v253_v60 = vmul.f32 %v249_v29, %v243_v44  ;;  %v643_v41 = vld [vmem:[%s1485_s3 + $0x10] sm:$0xff] }
  0x45   :  { %v254_v0 = vmul.f32 %v249_v29, %v244_v45  ;;  %v255_v1 = vmul.f32 %v249_v29, %v245_v47  ;;  %v256_v2 = vmul.f32 %v249_v29, %v246_v52  ;;  %v257_v3 = vmul.f32 %v249_v29, %v247_v53 }
  0x46   :  { %v258_v7 = vadd.f32 %v250_v57, %v232_v42  ;;  %v259_v8 = vadd.f32 %v251_v58, %v233_v48  ;;  %v260_v9 = vadd.f32 %v252_v59, %v234_v49  ;;  %v261_v10 = vadd.f32 %v253_v60, %v235_v50  ;;  %v644_v42 = vld [vmem:[%s1485_s3 + $0x18] sm:$0xff]  ;;  %v661_v48 = vld [vmem:[%s1485_s3 + $0xa0] sm:$0xff]  ;;  %v662_v49 = vld [vmem:[%s1485_s3 + $0xa8] sm:$0xff] }
  0x47   :  { %v262_v14 = vadd.f32 %v254_v0, %v236_v54  ;;  %v263_v15 = vadd.f32 %v255_v1, %v237_v55  ;;  %v264_v17 = vadd.f32 %v256_v2, %v238_v51  ;;  %v265_v18 = vadd.f32 %v257_v3, %v239_v56  ;;  %v645_v54 = vld [vmem:[%s1485_s3 + $0x20] sm:$0xff]  ;;  %v646_v55 = vld [vmem:[%s1485_s3 + $0x28] sm:$0xff] }
  0x48   :  { %v275_v22 = vstv %s1091_s21  ;;  %v293_v23 = vstv %s1093_s22  ;;  %v805_v24 = vpack.c.bf16 %v642_v4, %v641_v63  ;;  %v807_v25 = vpack.c.bf16 %v660_v6, %v659_v5  ;;  %v663_v63 = vld [vmem:[%s1485_s3 + $0xb0] sm:$0xff]  ;;  %v664_v4 = vld [vmem:[%s1485_s3 + $0xb8] sm:$0xff]  ;;  %s1199_s22 = sld [smem:[#allocation5 + $0x2]] }
  0x49   :  { %v276_v26 = vmul.f32 %v275_v22, %v266_v61  ;;  %v277_v27 = vmul.f32 %v275_v22, %v267_v62  ;;  %v278_v28 = vmul.f32 %v275_v22, %v268_v11  ;;  %v279_v29 = vmul.f32 %v275_v22, %v269_v12  ;;  %v647_v5 = vld [vmem:[%s1485_s3 + $0x30] sm:$0xff]  ;;  %v665_v11 = vld [vmem:[%s1485_s3 + $0xc0] sm:$0xff]  ;;  %v666_v12 = vld [vmem:[%s1485_s3 + $0xc8] sm:$0xff] }
  0x4a   :  { %v280_v30 = vmul.f32 %v275_v22, %v270_v13  ;;  %v281_v31 = vmul.f32 %v275_v22, %v271_v19  ;;  %v282_v32 = vmul.f32 %v275_v22, %v272_v20  ;;  %v283_v33 = vmul.f32 %v275_v22, %v273_v21  ;;  %806 = vmatpush3.bf16.msra.mxu0 %v805_v24  ;;  %v345_v19 = vld [vmem:[%s1482_s0] sm:$0x1]  ;;  %v346_v20 = vld [vmem:[%s1482_s0 + $0x4] sm:$0x1]  ;;  %v650_v24 = vld [vmem:[%s1485_s3 + $0x48] sm:$0xff] }
  0x4b   :  { %v284_v34 = vadd.f32 %v276_v26, %v258_v7  ;;  %v285_v16 = vadd.f32 %v277_v27, %v259_v8  ;;  %v286_v35 = vadd.f32 %v278_v28, %v260_v9  ;;  %v287_v36 = vadd.f32 %v279_v29, %v261_v10  ;;  %808 = vmatprep.subr.bf16.mxu0 %v807_v25  ;;  %v648_v10 = vld [vmem:[%s1485_s3 + $0x38] sm:$0xff]  ;;  %v347_v25 = vld [vmem:[%s1482_s0 + $0x8] sm:$0x1]  ;;  %v348_v29 = vld [vmem:[%s1482_s0 + $0xc] sm:$0x1] }
  0x4c   :  { %v288_v37 = vadd.f32 %v280_v30, %v262_v14  ;;  %v289_v38 = vadd.f32 %v281_v31, %v263_v15  ;;  %v290_v39 = vadd.f32 %v282_v32, %v264_v17  ;;  %v291_v40 = vadd.f32 %v283_v33, %v265_v18  ;;  %v649_v18 = vld [vmem:[%s1485_s3 + $0x40] sm:$0xff]  ;;  %v349_v30 = vld [vmem:[%s1482_s0 + $0x10] sm:$0x1] }
  0x4d   :  { %v294_v43 = vadd.f32 %v293_v23, %v284_v34  ;;  %v295_v44 = vadd.f32 %v293_v23, %v285_v16  ;;  %v296_v45 = vadd.f32 %v293_v23, %v286_v35  ;;  %v297_v46 = vadd.f32 %v293_v23, %v287_v36  ;;  %v350_v16 = vld [vmem:[%s1482_s0 + $0x14] sm:$0x1]  ;;  %v351_v35 = vld [vmem:[%s1482_s0 + $0x18] sm:$0x1] }
  0x4e   :  { %v298_v50 = vadd.f32 %v293_v23, %v288_v37  ;;  %v299_v47 = vadd.f32 %v293_v23, %v289_v38  ;;  %v300_v52 = vadd.f32 %v293_v23, %v290_v39  ;;  %v301_v53 = vadd.f32 %v293_v23, %v291_v40  ;;  %v352_v39 = vld [vmem:[%s1482_s0 + $0x1c] sm:$0x1] }
  0x4f   :  { %v302_v51 = vmul.f32 0.1, %v294_v43  ;;  %v303_v56 = vmul.f32 0.1, %v295_v44  ;;  %v304_v57 = vmul.f32 0.1, %v296_v45  ;;  %v809_v58 = vpack.c.bf16 %v644_v42, %v643_v41 }
  0x50   :  { %v305_v59 = vmul.f32 0.1, %v297_v46  ;;  %v306_v60 = vmul.f32 0.1, %v298_v50  ;;  %v307_v61 = vmul.f32 0.1, %v299_v47  ;;  %v811_v62 = vpack.c.bf16 %v662_v49, %v661_v48 }
  0x51   :  { %v308_v0 = vmul.f32 0.1, %v300_v52  ;;  %v309_v1 = vmul.f32 0.1, %v301_v53  ;;  %v310_v2 = vmax.f32 %v294_v43, %v302_v51  ;;  %v311_v3 = vmax.f32 %v295_v44, %v303_v56  ;;  %810 = vmatpush3.bf16.msra.mxu0 %v809_v58  ;;  %v363_v41 = vld [vmem:[%s1482_s0 + $0x1] sm:$0x1] }
  0x52   :  { %v312_v6 = vmax.f32 %v296_v45, %v304_v57  ;;  %v313_v7 = vmax.f32 %v297_v46, %v305_v59  ;;  %v314_v8 = vmax.f32 %v298_v50, %v306_v60  ;;  %v315_v9 = vmax.f32 %v299_v47, %v307_v61  ;;  %812 = vmatprep.subr.bf16.mxu0 %v811_v62  ;;  %v364_v46 = vld [vmem:[%s1482_s0 + $0x5] sm:$0x1]  ;;  %v365_v48 = vld [vmem:[%s1482_s0 + $0x9] sm:$0x1]  ;;  %v366_v49 = vld [vmem:[%s1482_s0 + $0xd] sm:$0x1] }
  0x53   :  { %v316_v13 = vmax.f32 %v300_v52, %v308_v0  ;;  %v317_v14 = vmax.f32 %v301_v53, %v309_v1  ;;  %v326_v15 = vrot.slane %v311_v3, 7  ;;  %v813_v17 = vpack.c.bf16 %v646_v55, %v645_v54  ;;  %v367_v54 = vld [vmem:[%s1482_s0 + $0x11] sm:$0x1]  ;;  %v368_v55 = vld [vmem:[%s1482_s0 + $0x15] sm:$0x1] }
  0x54   :  { %v328_v21 = vrot.slane %v312_v6, 6  ;;  %v330_v22 = vrot.slane %v313_v7, 5  ;;  %v332_v23 = vrot.slane %v314_v8, 4  ;;  %v334_v27 = vrot.slane %v315_v9, 3  ;;  %v369_v51 = vld [vmem:[%s1482_s0 + $0x19] sm:$0x1] }
  0x55   :  { %v327_v26 = vsel %vm173_vm0, %v326_v15, %v310_v2  ;;  %814 = vmatpush3.bf16.msra.mxu0 %v813_v17  ;;  %v815_v28 = vpack.c.bf16 %v664_v4, %v663_v63  ;;  %v336_v32 = vrot.slane %v316_v13, 2  ;;  %v817_v33 = vpack.c.bf16 %v648_v10, %v647_v5  ;;  %v370_v59 = vld [vmem:[%s1482_s0 + $0x1d] sm:$0x1]  ;;  %v389_v5 = vld [vmem:[%s1482_s0 + $0x2] sm:$0x1] }
  0x56   :  { %v329_v31 = vsel %vm176_vm1, %v328_v21, %v327_v26  ;;  %v819_v34 = vpack.c.bf16 %v666_v12, %v665_v11  ;;  %v338_v37 = vrot.slane %v317_v14, 1  ;;  %v821_v38 = vpack.c.bf16 %v650_v24, %v649_v18  ;;  %v390_v6 = vld [vmem:[%s1482_s0 + $0x6] sm:$0x1]  ;;  %v391_v11 = vld [vmem:[%s1482_s0 + $0xa] sm:$0x1] }
  0x57   :  { %v331_v36 = vsel %vm179_vm2, %v330_v22, %v329_v31  ;;  %816 = vmatprep.subr.bf16.mxu0 %v815_v28  ;;  %v354_v40 = vstv %s1167_s17  ;;  %v372_v60 = vstv %s1169_s18  ;;  %v392_v12 = vld [vmem:[%s1482_s0 + $0xe] sm:$0x1]  ;;  %v393_v13 = vld [vmem:[%s1482_s0 + $0x12] sm:$0x1]  ;;  %vm343_vm8 = vcmask 1048064  }
  0x58   :  { %v333_v42 = vsel %vm182_vm3, %v332_v23, %v331_v36  ;;  %v355_v43 = vmul.f32 %v354_v40, %v345_v19  ;;  %v356_v44 = vmul.f32 %v354_v40, %v346_v20  ;;  %v357_v45 = vmul.f32 %v354_v40, %v347_v25  ;;  %v394_v19 = vld [vmem:[%s1482_s0 + $0x16] sm:$0x1]  ;;  %v395_v20 = vld [vmem:[%s1482_s0 + $0x1a] sm:$0x1]  ;;  %v396_v21 = vld [vmem:[%s1482_s0 + $0x1e] sm:$0x1] }
  0x59   :  { %v335_v50 = vsel %vm185_vm4, %v334_v27, %v333_v42  ;;  %818 = vmatpush3.bf16.msra.mxu0 %v817_v33  ;;  %v358_v47 = vmul.f32 %v354_v40, %v348_v29  ;;  %v359_v52 = vmul.f32 %v354_v40, %v349_v30  ;;  %v360_v53 = vmul.f32 %v354_v40, %v350_v16  ;;  %v415_v30 = vld [vmem:[%s1482_s0 + $0x3] sm:$0x1]  ;;  %v416_v31 = vld [vmem:[%s1482_s0 + $0x7] sm:$0x1]  ;;  %v418_v36 = vld [vmem:[%s1482_s0 + $0xf] sm:$0x1] }
  0x5a   :  { %v337_v56 = vsel %vm188_vm5, %v336_v32, %v335_v50  ;;  %820 = vmatprep.subr.bf16.mxu0 %v819_v34  ;;  %v361_v57 = vmul.f32 %v354_v40, %v351_v35  ;;  %v362_v58 = vmul.f32 %v354_v40, %v352_v39  ;;  %v373_v62 = vmul.f32 %v372_v60, %v363_v41  ;;  %v417_v35 = vld [vmem:[%s1482_s0 + $0xb] sm:$0x1]  ;;  %v420_v42 = vld [vmem:[%s1482_s0 + $0x17] sm:$0x1] }
  0x5b   :  { %v339_v61 = vsel %vm191_vm6, %v338_v37, %v337_v56  ;;  %v374_v63 = vmul.f32 %v372_v60, %v364_v46  ;;  %v375_v0 = vmul.f32 %v372_v60, %v365_v48  ;;  %v376_v1 = vmul.f32 %v372_v60, %v366_v49  ;;  %v419_v37 = vld [vmem:[%s1482_s0 + $0x13] sm:$0x1] }
  0x5c   :  { %340 = vrot.lane.b32.xlu0 %v339_v61, %s868_s12  ;;  %v377_v2 = vmul.f32 %v372_v60, %v367_v54  ;;  %v378_v3 = vmul.f32 %v372_v60, %v368_v55  ;;  %v379_v4 = vmul.f32 %v372_v60, %v369_v51  ;;  %v380_v7 = vmul.f32 %v372_v60, %v370_v59  ;;  %s1316_s12 = sld [smem:[#allocation3]] }
  0x5d   :  { %822 = vmatpush3.bf16.msra.mxu0 %v821_v38  ;;  %v381_v8 = vadd.f32 %v373_v62, %v355_v43  ;;  %v382_v9 = vadd.f32 %v374_v63, %v356_v44  ;;  %v383_v10 = vadd.f32 %v375_v0, %v357_v45  ;;  %v384_v14 = vadd.f32 %v376_v1, %v358_v47  ;;  %v421_v43 = vld [vmem:[%s1482_s0 + $0x1b] sm:$0x1]  ;;  %v422_v44 = vld [vmem:[%s1482_s0 + $0x1f] sm:$0x1]  ;;  %v667_v1 = vld [vmem:[%s1485_s3 + $0xd0] sm:$0xff] }
  0x5e   :  { %v385_v15 = vadd.f32 %v377_v2, %v359_v52  ;;  %v386_v17 = vadd.f32 %v378_v3, %v360_v53  ;;  %v387_v18 = vadd.f32 %v379_v4, %v361_v57  ;;  %v388_v22 = vadd.f32 %v380_v7, %v362_v58  ;;  %v668_v2 = vld [vmem:[%s1485_s3 + $0xd8] sm:$0xff]  ;;  %v651_v7 = vld [vmem:[%s1485_s3 + $0x50] sm:$0xff] }
  0x5f   :  { %v398_v23 = vstv %s1177_s24  ;;  %v424_v24 = vstv %s1179_s25  ;;  %v442_v25 = vstv %s1199_s22  ;;  %s1390_s24 = sld [smem:[#allocation3 + $0x3]] }
  0x60   :  { %v399_v26 = vmul.f32 %v398_v23, %v389_v5  ;;  %v400_v27 = vmul.f32 %v398_v23, %v390_v6  ;;  %v401_v28 = vmul.f32 %v398_v23, %v391_v11  ;;  %v402_v29 = vmul.f32 %v398_v23, %v392_v12 }
  0x61   :  { %v403_v32 = vmul.f32 %v398_v23, %v393_v13  ;;  %v404_v33 = vmul.f32 %v398_v23, %v394_v19  ;;  %v405_v34 = vmul.f32 %v398_v23, %v395_v20  ;;  %v406_v16 = vmul.f32 %v398_v23, %v396_v21 }
  0x62   :  { %v407_v38 = vadd.f32 %v399_v26, %v381_v8  ;;  %v408_v39 = vadd.f32 %v400_v27, %v382_v9  ;;  %v409_v40 = vadd.f32 %v401_v28, %v383_v10  ;;  %v410_v41 = vadd.f32 %v402_v29, %v384_v14  ;;  %v652_v8 = vld [vmem:[%s1485_s3 + $0x58] sm:$0xff] }
  0x63   :  { %v411_v45 = vadd.f32 %v403_v32, %v385_v15  ;;  %v412_v46 = vadd.f32 %v404_v33, %v386_v17  ;;  %v413_v48 = vadd.f32 %v405_v34, %v387_v18  ;;  %v414_v49 = vadd.f32 %v406_v16, %v388_v22  ;;  %v44_v32 = vld [vmem:[%s1482_s0 + $0x8] sm:$0x1]  ;;  %v45_v33 = vld [vmem:[%s1482_s0 + $0xc] sm:$0x1] }
  0x64   :  { %v425_v50 = vmul.f32 %v424_v24, %v415_v30  ;;  %v426_v47 = vmul.f32 %v424_v24, %v416_v31  ;;  %v427_v52 = vmul.f32 %v424_v24, %v417_v35  ;;  %v428_v53 = vmul.f32 %v424_v24, %v418_v36  ;;  %v43_v31 = vld [vmem:[%s1482_s0 + $0x4] sm:$0x1]  ;;  %v46_v36 = vld [vmem:[%s1482_s0 + $0x10] sm:$0x1] }
  0x65   :  { %v429_v54 = vmul.f32 %v424_v24, %v419_v37  ;;  %v430_v55 = vmul.f32 %v424_v24, %v420_v42  ;;  %v431_v51 = vmul.f32 %v424_v24, %v421_v43  ;;  %v432_v56 = vmul.f32 %v424_v24, %v422_v44  ;;  %v47_v37 = vld [vmem:[%s1482_s0 + $0x14] sm:$0x1]  ;;  %v48_v43 = vld [vmem:[%s1482_s0 + $0x18] sm:$0x1] }
  0x66   :  { %v433_v57 = vadd.f32 %v425_v50, %v407_v38  ;;  %v434_v58 = vadd.f32 %v426_v47, %v408_v39  ;;  %v435_v59 = vadd.f32 %v427_v52, %v409_v40  ;;  %v436_v60 = vadd.f32 %v428_v53, %v410_v41 }
  0x67   :  { %v437_v61 = vadd.f32 %v429_v54, %v411_v45  ;;  %v438_v62 = vadd.f32 %v430_v55, %v412_v46  ;;  %v439_v63 = vadd.f32 %v431_v51, %v413_v48  ;;  %v440_v0 = vadd.f32 %v432_v56, %v414_v49  ;;  %v49_v48 = vld [vmem:[%s1482_s0 + $0x1c] sm:$0x1]  ;;  %v60_v54 = vld [vmem:[%s1482_s0 + $0x1] sm:$0x1]  ;;  %v61_v55 = vld [vmem:[%s1482_s0 + $0x5] sm:$0x1] }
  0x68   :  { %v443_v3 = vadd.f32 %v442_v25, %v433_v57  ;;  %v444_v4 = vadd.f32 %v442_v25, %v434_v58  ;;  %v445_v5 = vadd.f32 %v442_v25, %v435_v59  ;;  %v446_v6 = vadd.f32 %v442_v25, %v436_v60  ;;  %v62_v51 = vld [vmem:[%s1482_s0 + $0x9] sm:$0x1]  ;;  %v63_v60 = vld [vmem:[%s1482_s0 + $0xd] sm:$0x1] }
  0x69   :  { %v447_v9 = vadd.f32 %v442_v25, %v437_v61  ;;  %v448_v10 = vadd.f32 %v442_v25, %v438_v62  ;;  %v449_v11 = vadd.f32 %v442_v25, %v439_v63  ;;  %v450_v12 = vadd.f32 %v442_v25, %v440_v0  ;;  %v42_v25 = vld [vmem:[%s1482_s0] sm:$0x1]  ;;  %v64_v61 = vld [vmem:[%s1482_s0 + $0x11] sm:$0x1]  ;;  %v65_v62 = vld [vmem:[%s1482_s0 + $0x15] sm:$0x1] }
  0x6a   :  { %v451_v13 = vmul.f32 0.1, %v443_v3  ;;  %v452_v14 = vmul.f32 0.1, %v444_v4  ;;  %v453_v15 = vmul.f32 0.1, %v445_v5  ;;  %v823_v17 = vpack.c.bf16 %v668_v2, %v667_v1 }
  0x6b   :  { %v454_v18 = vmul.f32 0.1, %v446_v6  ;;  %v455_v19 = vmul.f32 0.1, %v447_v9  ;;  %v456_v20 = vmul.f32 0.1, %v448_v10  ;;  %v825_v21 = vpack.c.bf16 %v652_v8, %v651_v7 }
  0x6c   :  { %v457_v22 = vmul.f32 0.1, %v449_v11  ;;  %v458_v23 = vmul.f32 0.1, %v450_v12  ;;  %v459_v24 = vmax.f32 %v443_v3, %v451_v13  ;;  %v460_v26 = vmax.f32 %v444_v4, %v452_v14  ;;  %824 = vmatprep.subr.bf16.mxu0 %v823_v17  ;;  %v66_v1 = vld [vmem:[%s1482_s0 + $0x19] sm:$0x1] }
  0x6d   :  { %v461_v27 = vmax.f32 %v445_v5, %v453_v15  ;;  %v462_v28 = vmax.f32 %v446_v6, %v454_v18  ;;  %v463_v29 = vmax.f32 %v447_v9, %v455_v19  ;;  %v464_v30 = vmax.f32 %v448_v10, %v456_v20  ;;  %826 = vmatpush3.bf16.msra.mxu0 %v825_v21  ;;  %v67_v2 = vld [vmem:[%s1482_s0 + $0x1d] sm:$0x1]  ;;  %v86_v13 = vld [vmem:[%s1482_s0 + $0x2] sm:$0x1]  ;;  %v87_v14 = vld [vmem:[%s1482_s0 + $0x6] sm:$0x1] }
  0x6e   :  { %v465_v34 = vmax.f32 %v449_v11, %v457_v22  ;;  %v466_v16 = vmax.f32 %v450_v12, %v458_v23  ;;  %v475_v35 = vrot.slane %v460_v26, 7  ;;  %v51_v38 = vstv %s1316_s12  ;;  %v88_v20 = vld [vmem:[%s1482_s0 + $0xa] sm:$0x1]  ;;  %v89_v21 = vld [vmem:[%s1482_s0 + $0xe] sm:$0x1] }
  0x6f   :  { %v477_v39 = vrot.slane %v461_v27, 6  ;;  %v479_v40 = vrot.slane %v462_v28, 5  ;;  %v481_v41 = vrot.slane %v463_v29, 4  ;;  %v483_v42 = vrot.slane %v464_v30, 3  ;;  %v90_v22 = vld [vmem:[%s1482_s0 + $0x12] sm:$0x1] }
  0x70   :  { %v485_v44 = vrot.slane %v465_v34, 2  ;;  %v487_v45 = vrot.slane %v466_v16, 1  ;;  %v476_v46 = vsel %vm173_vm0, %v475_v35, %v459_v24  ;;  %v52_v49 = vmul.f32 %v51_v38, %v42_v25  ;;  %v91_v27 = vld [vmem:[%s1482_s0 + $0x16] sm:$0x1]  ;;  %v92_v28 = vld [vmem:[%s1482_s0 + $0x1a] sm:$0x1] }
  0x71   :  { %v478_v50 = vsel %vm176_vm1, %v477_v39, %v476_v46  ;;  %v53_v47 = vmul.f32 %v51_v38, %v43_v31  ;;  %v54_v52 = vmul.f32 %v51_v38, %v44_v32  ;;  %v55_v53 = vmul.f32 %v51_v38, %v45_v33  ;;  %v93_v29 = vld [vmem:[%s1482_s0 + $0x1e] sm:$0x1] }
  0x72   :  { %v480_v56 = vsel %vm179_vm2, %v479_v40, %v478_v50  ;;  %v56_v57 = vmul.f32 %v51_v38, %v46_v36  ;;  %v57_v58 = vmul.f32 %v51_v38, %v47_v37  ;;  %v58_v59 = vmul.f32 %v51_v38, %v48_v43  ;;  %v112_v37 = vld [vmem:[%s1482_s0 + $0x3] sm:$0x1]  ;;  %v114_v43 = vld [vmem:[%s1482_s0 + $0xb] sm:$0x1] }
  0x73   :  { %v482_v63 = vsel %vm182_vm3, %v481_v41, %v480_v56  ;;  %v59_v0 = vmul.f32 %v51_v38, %v49_v48  ;;  %v69_v3 = vstv %s1330_s14  ;;  %v95_v4 = vstv %s1332_s16  ;;  %v113_v38 = vld [vmem:[%s1482_s0 + $0x7] sm:$0x1] }
  0x74   :  { %v484_v5 = vsel %vm185_vm4, %v483_v42, %v482_v63  ;;  %v70_v6 = vmul.f32 %v69_v3, %v60_v54  ;;  %v71_v7 = vmul.f32 %v69_v3, %v61_v55  ;;  %v72_v8 = vmul.f32 %v69_v3, %v62_v51  ;;  %v653_v63 = vld [vmem:[%s1485_s3 + $0x60] sm:$0xff] }
  0x75   :  { %v486_v9 = vsel %vm188_vm5, %v485_v44, %v484_v5  ;;  %v73_v10 = vmul.f32 %v69_v3, %v63_v60  ;;  %v74_v11 = vmul.f32 %v69_v3, %v64_v61  ;;  %v75_v12 = vmul.f32 %v69_v3, %v65_v62  ;;  %v115_v44 = vld [vmem:[%s1482_s0 + $0xf] sm:$0x1]  ;;  %v669_v61 = vld [vmem:[%s1485_s3 + $0xe0] sm:$0xff]  ;;  %v671_v5 = vld [vmem:[%s1485_s3 + $0xf0] sm:$0xff] }
  0x76   :  { %v488_v15 = vsel %vm191_vm6, %v487_v45, %v486_v9  ;;  %v76_v17 = vmul.f32 %v69_v3, %v66_v1  ;;  %v77_v18 = vmul.f32 %v69_v3, %v67_v2  ;;  %v78_v19 = vadd.f32 %v70_v6, %v52_v49  ;;  %v116_v45 = vld [vmem:[%s1482_s0 + $0x13] sm:$0x1]  ;;  %v670_v62 = vld [vmem:[%s1485_s3 + $0xe8] sm:$0xff]  ;;  %v672_v6 = vld [vmem:[%s1485_s3 + $0xf8] sm:$0xff] }
  0x77   :  { %490 = vst.msk [vmem:[#allocation2 + $0x8] sm:$0xff] %vm194_vm7, %v488_v15  ;;  %v79_v23 = vadd.f32 %v71_v7, %v53_v47  ;;  %v80_v24 = vadd.f32 %v72_v8, %v54_v52  ;;  %v81_v26 = vadd.f32 %v73_v10, %v55_v53  ;;  %v82_v25 = vadd.f32 %v74_v11, %v56_v57  ;;  %v117_v47 = vld [vmem:[%s1482_s0 + $0x17] sm:$0x1]  ;;  %v118_v52 = vld [vmem:[%s1482_s0 + $0x1b] sm:$0x1] }
  0x78   :  { %v83_v30 = vadd.f32 %v75_v12, %v57_v58  ;;  %v84_v31 = vadd.f32 %v76_v17, %v58_v59  ;;  %v85_v32 = vadd.f32 %v77_v18, %v59_v0  ;;  %v96_v33 = vmul.f32 %v95_v4, %v86_v13  ;;  %v119_v53 = vld [vmem:[%s1482_s0 + $0x1f] sm:$0x1] }
  0x79   :  { %v97_v34 = vmul.f32 %v95_v4, %v87_v14  ;;  %v98_v16 = vmul.f32 %v95_v4, %v88_v20  ;;  %v99_v35 = vmul.f32 %v95_v4, %v89_v21  ;;  %v100_v36 = vmul.f32 %v95_v4, %v90_v22  ;;  %v655_v20 = vld [vmem:[%s1485_s3 + $0x70] sm:$0xff]  ;;  %v656_v21 = vld [vmem:[%s1485_s3 + $0x78] sm:$0xff] }
  0x7a   :  { %v101_v39 = vmul.f32 %v95_v4, %v91_v27  ;;  %v102_v40 = vmul.f32 %v95_v4, %v92_v28  ;;  %v103_v41 = vmul.f32 %v95_v4, %v93_v29  ;;  %v104_v42 = vadd.f32 %v96_v33, %v78_v19  ;;  %v654_v4 = vld [vmem:[%s1485_s3 + $0x68] sm:$0xff] }
  0x7b   :  { %v105_v46 = vadd.f32 %v97_v34, %v79_v23  ;;  %v106_v48 = vadd.f32 %v98_v16, %v80_v24  ;;  %v107_v49 = vadd.f32 %v99_v35, %v81_v26  ;;  %v108_v50 = vadd.f32 %v100_v36, %v82_v25 }
  0x7c   :  { %v109_v54 = vadd.f32 %v101_v39, %v83_v30  ;;  %v110_v55 = vadd.f32 %v102_v40, %v84_v31  ;;  %v111_v51 = vadd.f32 %v103_v41, %v85_v32  ;;  %v121_v56 = vstv %s1390_s24 }
  0x7d   :  { %v122_v57 = vmul.f32 %v121_v56, %v112_v37  ;;  %v123_v58 = vmul.f32 %v121_v56, %v113_v38  ;;  %v124_v59 = vmul.f32 %v121_v56, %v114_v43  ;;  %v125_v60 = vmul.f32 %v121_v56, %v115_v44 }
  0x7e   :  { %v126_v0 = vmul.f32 %v121_v56, %v116_v45  ;;  %v127_v1 = vmul.f32 %v121_v56, %v117_v47  ;;  %v128_v2 = vmul.f32 %v121_v56, %v118_v52  ;;  %v129_v3 = vmul.f32 %v121_v56, %v119_v53 }
  0x7f   :  { %v130_v7 = vadd.f32 %v122_v57, %v104_v42  ;;  %v131_v8 = vadd.f32 %v123_v58, %v105_v46  ;;  %v132_v9 = vadd.f32 %v124_v59, %v106_v48  ;;  %v133_v10 = vadd.f32 %v125_v60, %v107_v49 }
  0x80   :  { %v134_v11 = vadd.f32 %v126_v0, %v108_v50  ;;  %v135_v12 = vadd.f32 %v127_v1, %v109_v54  ;;  %v136_v13 = vadd.f32 %v128_v2, %v110_v55  ;;  %v137_v14 = vadd.f32 %v129_v3, %v111_v51 }
  0x81   :  { %v139_v15 = vstv %s1425_s13  ;;  %v827_v17 = vpack.c.bf16 %v670_v62, %v669_v61  ;;  %v829_v18 = vpack.c.bf16 %v654_v4, %v653_v63  ;;  %v831_v19 = vpack.c.bf16 %v672_v6, %v671_v5 }
  0x82   :  { %v140_v22 = vadd.f32 %v139_v15, %v130_v7  ;;  %v141_v23 = vadd.f32 %v139_v15, %v131_v8  ;;  %v142_v24 = vadd.f32 %v139_v15, %v132_v9  ;;  %v143_v26 = vadd.f32 %v139_v15, %v133_v10 }
  0x83   :  { %v144_v25 = vadd.f32 %v139_v15, %v134_v11  ;;  %v145_v27 = vadd.f32 %v139_v15, %v135_v12  ;;  %v146_v28 = vadd.f32 %v139_v15, %v136_v13  ;;  %v147_v29 = vadd.f32 %v139_v15, %v137_v14  ;;  %828 = vmatprep.subr.bf16.mxu0 %v827_v17 }
  0x84   :  { %v148_v30 = vmul.f32 0.1, %v140_v22  ;;  %v149_v31 = vmul.f32 0.1, %v141_v23  ;;  %v150_v32 = vmul.f32 0.1, %v142_v24  ;;  %830 = vmatpush3.bf16.msra.mxu0 %v829_v18  ;;  %v833_v33 = vpack.c.bf16 %v656_v21, %v655_v20 }
  0x85   :  { %v151_v34 = vmul.f32 0.1, %v143_v26  ;;  %v152_v16 = vmul.f32 0.1, %v144_v25  ;;  %v153_v35 = vmul.f32 0.1, %v145_v27  ;;  %832 = vmatprep.subr.bf16.mxu0 %v831_v19 }
  0x86   :  { %v154_v36 = vmul.f32 0.1, %v146_v28  ;;  %v155_v37 = vmul.f32 0.1, %v147_v29  ;;  %v156_v38 = vmax.f32 %v140_v22, %v148_v30  ;;  %v157_v39 = vmax.f32 %v141_v23, %v149_v31 }
  0x87   :  { %v158_v40 = vmax.f32 %v142_v24, %v150_v32  ;;  %v159_v41 = vmax.f32 %v143_v26, %v151_v34  ;;  %v160_v42 = vmax.f32 %v144_v25, %v152_v16  ;;  %v161_v43 = vmax.f32 %v145_v27, %v153_v35 }
  0x88   :  { %v162_v44 = vmax.f32 %v146_v28, %v154_v36  ;;  %v163_v45 = vmax.f32 %v147_v29, %v155_v37  ;;  %v172_v46 = vrot.slane %v157_v39, 7  ;;  %834 = vmatpush3.bf16.msra.mxu0 %v833_v33 }
  0x89   :  { %v175_v48 = vrot.slane %v158_v40, 6  ;;  %v178_v49 = vrot.slane %v159_v41, 5  ;;  %v181_v50 = vrot.slane %v160_v42, 4  ;;  %v184_v52 = vrot.slane %v161_v43, 3 }
  0x8a   :  { %v174_v47 = vsel %vm173_vm0, %v172_v46, %v156_v38  ;;  %v187_v54 = vrot.slane %v162_v44, 2  ;;  %v190_v51 = vrot.slane %v163_v45, 1 }
  0x8b   :  { %v177_v53 = vsel %vm176_vm1, %v175_v48, %v174_v47 }
  0x8c   :  { %v180_v55 = vsel %vm179_vm2, %v178_v49, %v177_v53 }
  0x8d   :  { %v183_v56 = vsel %vm182_vm3, %v181_v50, %v180_v55 }
  0x8e   :  { %v186_v57 = vsel %vm185_vm4, %v184_v52, %v183_v56 }
  0x8f   :  { %v189_v58 = vsel %vm188_vm5, %v187_v54, %v186_v57 }
  0x90   :  { %v192_v59 = vsel %vm191_vm6, %v190_v51, %v189_v58 }
  0x91   :  { %195 = vst.msk [vmem:[#allocation2] sm:$0xff] %vm194_vm7, %v192_v59 }
  0xb5   :  { %v636_v60 = vpop.permute.xlu0 %635 }
  0xb6   :  { %638 = vst.msk [vmem:[#allocation2 + $0x8] sm:$0xff] %vm343_vm8, %v636_v60 }
  0xbd   :  { %v640_v61 = vld [vmem:[#allocation2 + $0x8] sm:$0xff] }
  0xbe   :  { %737 = vmatprep.mubr.f32.mxu0 %v640_v61 }
  0xce   :  { %v341_v62 = vpop.permute.xlu0 %340 }
  0xcf   :  { %344 = vst.msk [vmem:[#allocation2] sm:$0xff] %vm343_vm8, %v341_v62 }
  0xd6   :  { %v639_v63 = vld [vmem:[#allocation2] sm:$0xff] }
  0xd7   :  { %738 = vmatmul.mubr.f32.vlgmr.msra.gmra.mrb[0].mxu0 %v639_v63 }
 0x1aa   :  { %v800_v0 = vpop.f32.mrb[0].mxu0 }
 0x1ab   :  { %v801_v1 = vpop.f32.mrb[1].mxu0 }
 0x1ac   :  { %v802_v2 = vadd.f32 %v801_v1, %v800_v0 }
 0x1ae   :  { %743 = vst [vmem:[%s1486_s4] sm:$0xff] %v802_v2 }
 0x1af   :  { %748 = vsyncpa [#allocation4], 1 }
 0x1b0   :  { %749 = vsyncpa [#allocation6], 1 }

</bundles_post_ra>
